<compile_context>
chip_gen: v5e
topology: v5e:2x2
jax: 0.10.0
libtpu: 0.0.40
codegen_flags: <defaults>
</compile_context>

<pallas_src>
import jax
import jax.numpy as jnp
from jax import lax
from jax.experimental import pallas as pl
from jax.experimental.pallas import tpu as pltpu


_UNROLL_CHANNEL_LIMIT = 16  # above this, use the MXU triangular-matmul form


def _cumsum_c_kernel(x_ref, o_ref):
    """x_ref / o_ref: (C, TS) lane-dense VMEM tiles; cumsum along axis 0."""
    C = x_ref.shape[0]
    x = x_ref[...].astype(jnp.float32)  # accumulate in f32 regardless of input dtype

    if C <= _UNROLL_CHANNEL_LIMIT:
        # Small channel count: unrolled running sum on the VPU, one wide store.
        acc = x[0:1, :]
        rows = [acc]
        for c in range(1, C):
            acc = acc + x[c:c + 1, :]
            rows.append(acc)
        out = jnp.concatenate(rows, axis=0)
    else:
        # Large channel count: cumsum == L @ X with L lower-triangular ones.
        row = lax.broadcasted_iota(jnp.int32, (C, C), 0)
        col = lax.broadcasted_iota(jnp.int32, (C, C), 1)
        ltri = (row >= col).astype(jnp.float32)
        out = jnp.dot(ltri, x, preferred_element_type=jnp.float32)

    o_ref[...] = out.astype(o_ref.dtype)


def _pick_spatial_tile(C, HW, itemsize):
    """Pick a lane-aligned spatial tile and the padded spatial extent."""
    hw_lane = pl.cdiv(HW, 128) * 128
    # Keep (2 input + 2 output) double-buffered blocks under ~8 MiB total so we
    # stay inside the scoped-VMEM default on v5e/v6e/v7x without flags.
    budget_bytes = 8 * 1024 * 1024
    per_buffer = budget_bytes // 4
    max_ts = max(128, (per_buffer // (C * itemsize)) // 128 * 128)
    ts = min(2048, max_ts, hw_lane)
    hw_pad = pl.cdiv(HW, ts) * ts
    return ts, hw_pad


def cumsum_axis1(x):
    """Equivalent of torch.cumsum(val, 1) for a (B, C, *spatial) tensor."""
    B, C = x.shape[0], x.shape[1]
    HW = 1
    for s in x.shape[2:]:
        HW *= s

    # Lane-dense layout: flatten trailing dims into the last (lane) axis.
    xf = x.reshape(B, C, HW)
    ts, hw_pad = _pick_spatial_tile(C, HW, xf.dtype.itemsize)
    if hw_pad != HW:
        xf = jnp.pad(xf, ((0, 0), (0, 0), (0, hw_pad - HW)))

    n_tiles = hw_pad // ts
    out = pl.pallas_call(
        _cumsum_c_kernel,
        out_shape=jax.ShapeDtypeStruct((B, C, hw_pad), x.dtype),
        grid=(B, n_tiles),
        in_specs=[pl.BlockSpec((None, C, ts), lambda b, t: (b, 0, t))],
        out_specs=pl.BlockSpec((None, C, ts), lambda b, t: (b, 0, t)),
        compiler_params=pltpu.CompilerParams(
            dimension_semantics=("parallel", "parallel"),
        ),
    )(xf)

    if hw_pad != HW:
        out = out[:, :, :HW]
    return out.reshape(x.shape)


if __name__ == "__main__":
    key = jax.random.PRNGKey(0)

    # Primary test: the module's implied shape (batch=2, channels=4, 16x16).
    x = jax.random.normal(key, (2, 4, 16, 16), dtype=jnp.float32)
    out = cumsum_axis1(x)
    jax.block_until_ready(out)
    ref = jnp.cumsum(x, axis=1)
    assert out.shape == ref.shape and out.dtype == ref.dtype
    assert jnp.allclose(out, ref, atol=1e-5, rtol=1e-5)

    # Secondary test: odd spatial extent exercises the lane-padding path.
    k2 = jax.random.PRNGKey(1)
    x2 = jax.random.normal(k2, (2, 4, 10, 10), dtype=jnp.float32)
    out2 = cumsum_axis1(x2)
    jax.block_until_ready(out2)
    assert jnp.allclose(out2, jnp.cumsum(x2, axis=1), atol=1e-5, rtol=1e-5)

    # Tertiary test: larger channel count exercises the MXU matmul path.
    k3 = jax.random.PRNGKey(2)
    x3 = jax.random.normal(k3, (2, 24, 8, 8), dtype=jnp.float32)
    out3 = cumsum_axis1(x3)
    jax.block_until_ready(out3)
    assert jnp.allclose(out3, jnp.cumsum(x3, axis=1), atol=1e-4, rtol=1e-4)

    print("KERNEL_OK")
</pallas_src>

<mosaic_0001>
module attributes {stable_mosaic.version = 11 : i64} {
  func.func @_cumsum_c_kernel(%arg0: i32, %arg1: i32, %arg2: memref<1x4x256xf32, #tpu.memory_space<vmem>>, %arg3: memref<1x4x256xf32, #tpu.memory_space<vmem>>) attributes {dimension_semantics = [#tpu.dimension_semantics<parallel>, #tpu.dimension_semantics<parallel>], iteration_bounds = array<i64: 2, 1>, scalar_prefetch = 0 : i64, scratch_operands = 0 : i64, tpu.core_type = #tpu.core_type<tc>, window_params = [{transform_indices = @transform_0, window_bounds = array<i64: 1, 4, 256>}, {transform_indices = @transform_1, window_bounds = array<i64: 1, 4, 256>}]} {
    %c0 = arith.constant 0 : index
    %c0_0 = arith.constant 0 : index
    %c0_1 = arith.constant 0 : index
    %0 = vector.load %arg2[%c0, %c0_0, %c0_1] : memref<1x4x256xf32, #tpu.memory_space<vmem>>, vector<1x4x256xf32>
    %1 = vector.shape_cast %0 : vector<1x4x256xf32> to vector<4x256xf32>
    %2 = vector.extract_strided_slice %1 {offsets = [0, 0], sizes = [1, 256], strides = [1, 1]} : vector<4x256xf32> to vector<1x256xf32>
    %3 = vector.extract_strided_slice %1 {offsets = [1, 0], sizes = [1, 256], strides = [1, 1]} : vector<4x256xf32> to vector<1x256xf32>
    %4 = arith.addf %2, %3 : vector<1x256xf32>
    %5 = vector.extract_strided_slice %1 {offsets = [2, 0], sizes = [1, 256], strides = [1, 1]} : vector<4x256xf32> to vector<1x256xf32>
    %6 = arith.addf %4, %5 : vector<1x256xf32>
    %7 = vector.extract_strided_slice %1 {offsets = [3, 0], sizes = [1, 256], strides = [1, 1]} : vector<4x256xf32> to vector<1x256xf32>
    %8 = arith.addf %6, %7 : vector<1x256xf32>
    %9 = tpu.concatenate %2, %4, %6, %8 in 0 : vector<1x256xf32>, vector<1x256xf32>, vector<1x256xf32>, vector<1x256xf32> -> vector<4x256xf32>
    %c0_2 = arith.constant 0 : index
    %c0_3 = arith.constant 0 : index
    %c0_4 = arith.constant 0 : index
    %10 = vector.load %arg3[%c0_2, %c0_3, %c0_4] : memref<1x4x256xf32, #tpu.memory_space<vmem>>, vector<1x4x256xf32>
    %11 = vector.shape_cast %10 : vector<1x4x256xf32> to vector<4x256xf32>
    %12 = vector.shape_cast %9 : vector<4x256xf32> to vector<1x4x256xf32>
    tpu.vector_store %arg3[%c0_2, %c0_3, %c0_4], %12 {strides = array<i32>} : memref<1x4x256xf32, #tpu.memory_space<vmem>>, vector<1x4x256xf32>,
    return
  }
  func.func @transform_0(%arg0: i32, %arg1: i32) -> (i32, i32, i32) {
    %c0_i32 = arith.constant 0 : i32
    %c0_i32_0 = arith.constant 0 : i32
    return %arg0, %c0_i32, %arg1 : i32, i32, i32
  }
  func.func @transform_1(%arg0: i32, %arg1: i32) -> (i32, i32, i32) {
    %c0_i32 = arith.constant 0 : i32
    %c0_i32_0 = arith.constant 0 : i32
    return %arg0, %c0_i32, %arg1 : i32, i32, i32
  }
}

</mosaic_0001>

<bundles_post_ra>
// kernel: tpu_custom_call.1
= control target key start
LH: loop header
LB: loop body
LE: loop exit
PB: predicated region body
PF: predicated region fallthrough
CT: control target
= control target key end

     0   :  { %6 = vsyncpa [#allocation3], 0  ;;  %s633_s0 = inlined_call_operand.hbm [shape: f32[2,4,256], index: 0, kind: input, shape index: {}]   ;;  %s634_s1 = inlined_call_operand.hbm [shape: f32[2,4,256], index: 1, kind: output, shape index: {}]  }
   0x1   :  { %8 = vsyncpa [#allocation3 + $0x1], 0 }
   0x2   :  { %9 = vsyncpa [#allocation4], 0 }
   0x3   :  { %11 = vsyncpa [#allocation4 + $0x1], 0  ;;  %s513_s6 = smov 0   ;;  %s515_s7 = smov 0  }
   0x4   :  { %s517_s8 = smov 0   ;;  %s519_s9 = smov 0  }
   0x5   :  { %s521_s10 = smov 0   ;;  %s523_s11 = smov 0  }
   0x6 LB: > { %s307_s12 = sadd.s32 4294967295, %s501_s11   ;;  %s308_s13 = sadd.s32 4294967294, %s501_s11   ;;  %s501_s11 = sphi %s523_s11, %s17_s11   ;;  %s497_s10 = sphi %s521_s10, %s643_s10   ;;  %s493_s9 = sphi %s519_s9, %s642_s9   ;;  %s489_s8 = sphi %s517_s8, %s641_s8   ;;  %s485_s7 = sphi %s515_s7, %s640_s7   ;;  %s481_s6 = sphi %s513_s6, %s639_s6  }
   0x7   : > { %s29_s14 = sadd.s32 1, %s497_s10  ;;  %s38_s15 = sadd.s32 1, %s489_s8 }
   0x8   : > { %p31_p0 = scmp.ge.s32.totalorder %s29_s14, 2  ;;  %p45_p1 = scmp.ne.s32.totalorder %s489_s8, %s485_s7 }
   0x9   : > { %p46_p2 = scmp.eq.s32.totalorder %s501_s11, 0  ;;  %p51_p3 = scmp.ne.s32.totalorder %s485_s7, %s481_s6 }
   0xa   : > { %s645_s14 = smov (%p31_p0, %s29_s14), 0  ;;  %p52_p5 = scmp.eq.s32.totalorder %s307_s12, 0 }
   0xb   : > { %p554_p4 = por %p46_p2, %p45_p1  ;;  %s33_s17 = ssub.s32 %s497_s10, %s645_s14 }
   0xc   : > { %p77_p6 = scmp.eq.s32.totalorder %s307_s12, 1  ;;  %p36_p7 = scmp.eq.s32.totalorder %s33_s17, 0 }
   0xd   : > { %p560_p8 = por %p52_p5, %p51_p3  ;;  %p83_p10 = scmp.eq.s32.totalorder %s308_s13, 1 }
   0xe   : > { %p564_p9 = por %p77_p6, %p45_p1  ;;  %p310_p12 = scmp.ge.s32.totalorder %s501_s11, 2 }
   0xf   : > { %s569_s20 = scalar_select %p36_p7, %s489_s8, %s38_s15  }
  0x10   : > { %p571_p11 = por %p83_p10, %p51_p3  ;;  %p339_p13 = scmp.lt.s32.totalorder %s501_s11, 2 }
  0x11   : > { %s103_s22 = sand.u32 1, %s489_s8   ;;  %s325_s24 = sshll.u32 %s497_s10, 3 }
  0x12   : > { %s311_s23 = sshll.u32 %s103_s22, 3  ;;  %s114_s27 = scalar_lea.hbm %s633_s0, %s325_s24 }
  0x13   : > { %s107_s28 = scalar_lea.vmem [#allocation2], %s311_s23  ;;  %s116_s30 = sshll.u32 %s114_s27, 4  ;;  %s117_s30 = int_to_ptr.hbm [resolvable:$true] %s116_s30 }
  0x14   : > { %s118_s29 = sshll.u32 %s107_s28, 4  ;;  %p332_p0 = pnand %p339_p13, %p554_p4  ;;  %s119_s29 = int_to_ptr.vmem [resolvable:$true] %s118_s29 }
  0x15   : > { %p314_p1 = scmp.ge.s32.totalorder %s501_s11, 1  ;;  %p123_p2 = scmp.lt.s32.totalorder %s501_s11, 3 }
  0x16   : > { %s104_s2 = scalar_lea.sflag [#allocation3], %s103_s22 }
  0x17   : > { %334 = dma.hbm_to_vmem [thread:$0]  (!%p332_p0), %s117_s30, 128, %s119_s29, %s104_s2  }
  0x18   : > { %p124_p3 = pnand %p314_p1, %p123_p2 }
  0x19   : > { %s587_s3 = sand.u32 (!%p124_p3), 1, %s485_s7  }
  0x1a   : > { %127 = sbr.rel (%p124_p3) target bundleno = 50 (0x32), region = 24  ;;  %s315_s4 = sshll.u32 (!%p124_p3), %s587_s3, 3 }
  0x1b   : > { %s130_s5 = scalar_lea.sflag (!%p124_p3), [#allocation3], %s587_s3  ;;  %s133_s12 = scalar_lea.vmem (!%p124_p3), [#allocation2], %s315_s4 }
  0x1f   : > { %472 = dma.done.wait (%p560_p8), %s130_s5, 128  }
  0x20   : > { %474 = vsyncadd (%p560_p8), %s130_s5, 4294967168  ;;  %v155_v0 = vld [vmem:[%s133_s12] sm:$0xff]  ;;  %s326_s13 = sshll.u32 %s493_s9, 3  ;;  %vm188_vm0 = vcmask 1040384   ;;  %vm191_vm1 = vcmask 1041408   ;;  %vm194_vm2 = vcmask 1042432  }
  0x21   : > { %v317_v1 = vrot.slane %v155_v0, 9  ;;  %v318_v2 = vrot.slane %v155_v0, 10  ;;  %v319_v4 = vrot.slane %v155_v0, 11  ;;  %v169_v5 = vperm.slane %v155_v0, 0  ;;  %s218_s17 = scalar_lea.hbm %s634_s1, %s326_s13  ;;  %s152_s9 = scalar_lea.vmem [#allocation5], %s315_s4 }
  0x22   : > { %v170_v6 = vperm.slane %v155_v0, 4  ;;  %s220_s18 = sshll.u32 %s152_s9, 4  ;;  %s222_s22 = sshll.u32 %s218_s17, 4  ;;  %vm200_vm3 = vcmask 1043456   ;;  %s221_s18 = int_to_ptr.vmem [resolvable:$true] %s220_s18  ;;  %s223_s22 = int_to_ptr.hbm [resolvable:$true] %s222_s22 }
  0x23   : > { %v160_v3 = vadd.f32 %v317_v1, %v155_v0  ;;  %s205_s23 = scalar_lea.sflag [#allocation4], %s587_s3  ;;  %s433_s24 = sshra.s32 %s223_s22, 4  ;;  %s434_s24 = int_to_ptr.hbm [resolvable:$true] %s433_s24 }
  0x24   : > { %s435_s25 = scalar_lea.hbm %s434_s24, 8  ;;  %s439_s28 = scalar_lea.hbm %s634_s1, 16 }
  0x25   : > { %v164_v7 = vadd.f32 %v318_v2, %v160_v3  ;;  %v174_v8 = vperm.slane %v160_v3, 0  ;;  %v175_v9 = vperm.slane %v160_v3, 4  ;;  %p436_p4 = scmp.ne.s32.totalorder %s434_s24, %s435_s25  ;;  %p440_p7 = scmp.lt.s32.totalorder %s434_s24, %s634_s1 }
  0x26   : > { %p441_p8 = scmp.lt.s32.totalorder %s439_s28, %s435_s25 }
  0x27   : > { %v168_v10 = vadd.f32 %v319_v4, %v164_v7  ;;  %v179_v11 = vperm.slane %v164_v7, 0  ;;  %v180_v12 = vperm.slane %v164_v7, 4  ;;  %v189_v13 = vsel %vm188_vm0, %v169_v5, %v174_v8  ;;  %p437_p5 = pnand %p436_p4, %p564_p9 }
  0x28   : > { %v190_v14 = vsel %vm188_vm0, %v170_v6, %v175_v9  ;;  %p442_p10 = por %p441_p8, %p440_p7 }
  0x29   : > { %v184_v15 = vperm.slane %v168_v10, 0  ;;  %v185_v16 = vperm.slane %v168_v10, 4  ;;  %v192_v17 = vsel %vm191_vm1, %v189_v13, %v179_v11  ;;  %v193_v18 = vsel %vm191_vm1, %v190_v14, %v180_v12  ;;  %p438_p6 = pneg %p437_p5 }
  0x2b   : > { %v195_v19 = vsel %vm194_vm2, %v192_v17, %v184_v15  ;;  %v196_v20 = vsel %vm194_vm2, %v193_v18, %v185_v16  ;;  %p443_p13 = pnand %p442_p10, %p438_p6 }
  0x2c   : > { %v199_v21 = vrot.slane %v196_v20, 4 }
  0x2e   : > { %v201_v22 = vsel %vm200_vm3, %v195_v19, %v199_v21 }
  0x2f   : > { %203 = vst [vmem:[%s152_s9] sm:$0xff] %v201_v22 }
  0x30   : > { %446 = shalt.err (!%p443_p13)
}
  0x31   : > { %329 = dma.vmem_to_hbm [thread:$0]  (%p564_p9), %s221_s18, 128, %s223_s22, %s205_s23  }
  0x32 PF: > { %s234_s2 = sand.u32 1, %s481_s6   ;;  %p336_p0 = pnand %p310_p12, %p571_p11 }
  0x33   : > { %s235_s3 = scalar_lea.sflag [#allocation4], %s234_s2 }
  0x34   : > { %p337_p1 = pneg %p336_p0 }
  0x36   : > { %476 = dma.done.wait (%p337_p1), %s235_s3, 128  }
  0x37   : > { %478 = vsyncadd (%p337_p1), %s235_s3, 4294967168  ;;  %s17_s11 = sadd.s32 1, %s501_s11   ;;  %s639_s6 = smov %s485_s7 }
  0x38   : > { %p14_p2 = scmp.ge.s32.totalorder %s17_s11, 4   ;;  %s640_s7 = smov %s489_s8 }
  0x39   : > { %s641_s8 = smov %s569_s20  ;;  %s642_s9 = smov %s497_s10 }
  0x3a   : > { %s643_s10 = smov %s645_s14  ;;  %16 = sbr.rel (!%p14_p2) target bundleno = 6 (0x6), region = 69 }
  0x3f   :  { %241 = vsyncpa [#allocation3], 1 }
  0x40   :  { %243 = vsyncpa [#allocation3 + $0x1], 1 }
  0x41   :  { %244 = vsyncpa [#allocation4], 1 }
  0x42   :  { %246 = vsyncpa [#allocation4 + $0x1], 1 }

</bundles_post_ra>
